<compile_context>
chip_gen: v5e
topology: v5e:2x2
jax: 0.10.0
libtpu: 0.0.40
codegen_flags: <defaults>
</compile_context>

<pallas_src>
import functools

import jax
import jax.numpy as jnp
from jax.experimental import pallas as pl
from jax.experimental.pallas import tpu as pltpu


def _tv_kernel(x_ref, out_ref, *scratch, p, eps, inv_c, W, L, gi, reduction):
    """Processes one (bN, C, L) block; L = H*W is the lane-dense axis."""
    bN = x_ref.shape[0]
    steps = bN // gi

    # Tiny (1, 1, L) boundary masks over the flat index f = h*W + w.  Zeroing
    # the wrapped element of each roll reproduces replicate padding exactly.
    flat = jax.lax.broadcasted_iota(jnp.int32, (1, 1, L), 2)
    w_mask = (flat % W != W - 1).astype(jnp.float32)    # zero where w == W-1
    h_mask = (flat < (L - W)).astype(jnp.float32)       # zero where h == H-1

    def diff_of(i0):
        x = x_ref[pl.ds(i0, gi)].astype(jnp.float32)    # (gi, C, L) f32
        x_right = pltpu.roll(x, shift=L - 1, axis=2)    # x[..., (f + 1) % L]
        x_down = pltpu.roll(x, shift=L - W, axis=2)     # x[..., (f + W) % L]
        x_diff = (x - x_right) * w_mask
        y_diff = (x - x_down) * h_mask
        diff = x_diff * x_diff + y_diff * y_diff        # (gi, C, L)
        if p == 1:
            # Channel mean (divide folded into a constant multiply), then sqrt
            # on the EUP; eps added inside the mean as in PyTorch.
            diff = jnp.sqrt(jnp.sum(diff + eps, axis=1, keepdims=True) * inv_c)
        return diff                                     # (gi, c_out, L)

    def foreach_slice(fn):
        # Inner sub-slice loop bounds the f32 temporaries so the DMA block can
        # stay large without blowing scoped VMEM.
        if steps <= 4:
            for s in range(steps):                      # static slices
                fn(s * gi)
        else:
            def body(i, carry):
                fn(pl.multiple_of(i * gi, gi))
                return carry
            jax.lax.fori_loop(0, steps, body, 0)

    if reduction == 'none':
        def emit(i0):
            out_ref[pl.ds(i0, gi)] = diff_of(i0).astype(out_ref.dtype)
        foreach_slice(emit)
        return

    acc_ref, = scratch
    b = pl.program_id(1)

    @pl.when(b == 0)
    def _init():
        acc_ref[...] = jnp.zeros_like(acc_ref)

    def accumulate(i0):
        # Reduce only over the leading (cross-vreg) axis: pure VPU adds.
        acc_ref[...] += jnp.sum(diff_of(i0), axis=0)

    foreach_slice(accumulate)

    @pl.when(b == pl.num_programs(1) - 1)
    def _finalize():
        # Single cross-lane/sublane reduce, once per core.
        out_ref[...] = jnp.zeros_like(out_ref) + jnp.sum(acc_ref[...])


def _largest_divisor_leq(n, limit):
    """Largest divisor of n that is <= limit (always at least 1)."""
    limit = max(1, min(int(n), int(limit)))
    best = 1
    for d in range(1, n + 1):
        if n % d == 0 and d <= limit:
            best = d
    return best


def _device_vmem_bytes():
    """Physical per-core VMEM; conservative 64 MiB (v7x per-TC) fallback."""
    try:
        cap = getattr(pltpu.get_tpu_info(), 'vmem_capacity_bytes', None)
        if cap:
            return int(cap)
    except Exception:
        pass
    return 64 << 20


class TVLoss:
    """Pallas-TPU port of the PyTorch TVLoss module (forward only)."""

    _SLICE_F32_BUDGET = 512 << 10     # f32 bytes of one in-kernel sub-slice
    _TEMP_FACTOR = 6                  # x, x_right, x_down, x_diff, y_diff, diff
    _SLACK = 2 << 20

    def __init__(self, p, reduction='mean', eps=1e-08):
        if p not in {1, 2}:
            raise ValueError('p must be 1 or 2')
        if reduction not in {'mean', 'sum', 'none'}:
            raise ValueError("reduction must be 'mean', 'sum', or 'none'")
        self.p = p
        self.reduction = reduction
        self.eps = eps

    @staticmethod
    def _vmem_limit(needed, usable):
        # Leave the scoped default alone for small pipelines; otherwise ask
        # for what we actually need, capped at the device's physical VMEM.
        if needed <= (12 << 20):
            return None
        return int(min(needed + (4 << 20), usable))

    def __call__(self, x, target=None):
        del target                                   # ignored, as in PyTorch
        x = jnp.asarray(x)                           # native dtype; upcast in vregs
        if x.ndim != 4:
            raise ValueError('input must be 4D (N, C, H, W)')
        N, C, H, W = x.shape
        L = H * W
        itemsize = jnp.dtype(x.dtype).itemsize
        c_out = 1 if self.p == 1 else C

        cap = _device_vmem_bytes()
        usable = int(0.9 * cap)
        # Per-buffer DMA block budget: ~8 MiB on 128 MiB-VMEM chips (v5e/v6e),
        # ~5 MiB on v7x (64 MiB per TensorCore).
        budget_in = (8 << 20) if cap >= (100 << 20) else (5 << 20)

        # Lane-dense view: free collapse of the contiguous trailing dims.
        x3 = x.reshape(N, C, L)

        cost = pl.CostEstimate(
            flops=int(8 * N * C * L),
            transcendentals=int(N * L if self.p == 1 else 0),
            bytes_accessed=int(N * C * L * itemsize
                               + (N * c_out * L * itemsize
                                  if self.reduction == 'none' else 4)))

        if self.reduction == 'none':
            per_img_in = C * L * itemsize
            bN = _largest_divisor_leq(N, budget_in // max(per_img_in, 1))
            gi = _largest_divisor_leq(bN, self._SLICE_F32_BUDGET // max(C * L * 4, 1))
            n_blocks = N // bN
            # Deeper buffering only when blocks are unavoidably tiny but many.
            n_buf = 3 if (n_blocks >= 4 and bN * per_img_in < (1 << 20)) else 2
            spec_kw = dict(pipeline_mode=pl.Buffered(3)) if n_buf == 3 else {}
            needed = (n_buf * bN * (C + c_out) * L * itemsize
                      + self._TEMP_FACTOR * gi * C * L * 4 + self._SLACK)
            kern = functools.partial(
                _tv_kernel, p=self.p, eps=self.eps, inv_c=1.0 / C,
                W=W, L=L, gi=gi, reduction='none')
            out = pl.pallas_call(
                kern,
                out_shape=jax.ShapeDtypeStruct((N, c_out, L), x.dtype),
                grid=(n_blocks,),
                in_specs=[pl.BlockSpec((bN, C, L), lambda b: (b, 0, 0), **spec_kw)],
                out_specs=pl.BlockSpec((bN, c_out, L), lambda b: (b, 0, 0)),
                compiler_params=pltpu.CompilerParams(
                    dimension_semantics=("parallel",),
                    vmem_limit_bytes=self._vmem_limit(needed, usable)),
                cost_estimate=cost)(x3)
            return out.reshape(N, c_out, H, W)

        # ---- 'sum' / 'mean' ----
        Nr, Cr = N, C
        if self.p == 2 and Nr % 2 == 1 and Cr % 2 == 0:
            # Exact for p=2 (channels are independent): fold channels into the
            # batch so the leading 'parallel' axis is even and both v7x
            # TensorCores get half the work (also enriches bN divisors).
            Nr, Cr = Nr * 2, Cr // 2
            x3 = x3.reshape(Nr, Cr, L)
        c_acc = 1 if self.p == 1 else Cr

        n_par = 2 if (Nr >= 2 and Nr % 2 == 0) else 1
        n_half = Nr // n_par
        per_img_in = Cr * L * itemsize
        bN = _largest_divisor_leq(n_half, budget_in // max(per_img_in, 1))
        gi = _largest_divisor_leq(bN, self._SLICE_F32_BUDGET // max(Cr * L * 4, 1))
        bpc = n_half // bN                           # blocks per core
        n_buf = 3 if (bpc >= 4 and bN * per_img_in < (1 << 20)) else 2
        spec_kw = dict(pipeline_mode=pl.Buffered(3)) if n_buf == 3 else {}
        needed = (n_buf * bN * Cr * L * itemsize
                  + self._TEMP_FACTOR * gi * Cr * L * 4
                  + c_acc * L * 4 + self._SLACK)
        kern = functools.partial(
            _tv_kernel, p=self.p, eps=self.eps, inv_c=1.0 / Cr,
            W=W, L=L, gi=gi, reduction=self.reduction)
        partials = pl.pallas_call(
            kern,
            out_shape=jax.ShapeDtypeStruct((n_par, 1, 1), jnp.float32),
            grid=(n_par, bpc),
            in_specs=[pl.BlockSpec((bN, Cr, L),
                                   lambda c, b: (c * bpc + b, 0, 0), **spec_kw)],
            out_specs=pl.BlockSpec((1, 1, 1), lambda c, b: (c, 0, 0)),
            scratch_shapes=[pltpu.VMEM((c_acc, L), jnp.float32)],
            compiler_params=pltpu.CompilerParams(
                dimension_semantics=("parallel", "arbitrary"),
                vmem_limit_bytes=self._vmem_limit(needed, usable)),
            cost_estimate=cost)(x3)

        total = jnp.sum(partials)
        if self.reduction == 'mean':
            total = total * (1.0 / float(N * c_out * H * W))
        return total.astype(x.dtype)


def _tv_loss_ref(x, p, reduction='mean', eps=1e-08):
    """Pure-JAX reference matching the PyTorch forward exactly."""
    xp = jnp.pad(x, ((0, 0), (0, 0), (0, 1), (0, 1)), mode='edge')
    x_diff = xp[..., :-1, :-1] - xp[..., :-1, 1:]
    y_diff = xp[..., :-1, :-1] - xp[..., 1:, :-1]
    diff = x_diff ** 2 + y_diff ** 2
    if p == 1:
        diff = jnp.sqrt(jnp.mean(diff + eps, axis=1, keepdims=True))
    if reduction == 'mean':
        return diff.mean()
    if reduction == 'sum':
        return diff.sum()
    return diff


if __name__ == "__main__":
    key0, key1 = jax.random.split(jax.random.PRNGKey(0))
    x = jax.random.normal(key0, (2, 4, 16, 16), dtype=jnp.float32)

    cases = [
        dict(p=1, reduction='mean'),   # vectorial TV norm, scalar reduction
        dict(p=2, reduction='sum'),    # p=2 variant, scalar reduction
        dict(p=2, reduction='none'),   # full-map output path
        dict(p=1, reduction='none'),   # channel-reduced map output path
    ]
    for kw in cases:
        mod = TVLoss(**kw)
        out = mod(x)
        jax.block_until_ready(out)
        ref = _tv_loss_ref(x, eps=mod.eps, **kw)
        assert out.shape == ref.shape, (kw, out.shape, ref.shape)
        assert jnp.allclose(out, ref, rtol=1e-5, atol=1e-5), (kw, out, ref)

    # Odd batch: exercises the p=2 channel-folding (2-way split) and the
    # single-partial (n_par=1) reduction paths.
    x_odd = jax.random.normal(key1, (3, 4, 16, 16), dtype=jnp.float32)
    for kw in [dict(p=2, reduction='mean'), dict(p=1, reduction='sum')]:
        mod = TVLoss(**kw)
        out = mod(x_odd)
        jax.block_until_ready(out)
        ref = _tv_loss_ref(x_odd, eps=mod.eps, **kw)
        assert jnp.allclose(out, ref, rtol=1e-5, atol=1e-5), (kw, out, ref)

    print("KERNEL_OK")
</pallas_src>

<mosaic_0001>
module attributes {stable_mosaic.version = 11 : i64} {
  func.func @_tv_kernel(%arg0: i32, %arg1: i32, %arg2: memref<1x4x256xf32, #tpu.memory_space<vmem>>, %arg3: memref<1x1x1xf32, #tpu.memory_space<vmem>>, %arg4: memref<1x256xf32, #tpu.memory_space<vmem>>) attributes {dimension_semantics = [#tpu.dimension_semantics<parallel>, #tpu.dimension_semantics<arbitrary>], iteration_bounds = array<i64: 2, 1>, scalar_prefetch = 0 : i64, scratch_operands = 1 : i64, tpu.core_type = #tpu.core_type<tc>, window_params = [{transform_indices = @transform_0, window_bounds = array<i64: 1, 4, 256>}, {transform_indices = @transform_1, window_bounds = array<i64: 1, 1, 1>}]} {
    %0 = tpu.iota {dimensions = array<i32: 2>} : vector<1x1x256xi32>
    %c16_i32 = arith.constant 16 : i32
    %c0_i32 = arith.constant 0 : i32
    %1 = arith.cmpi eq, %c16_i32, %c0_i32 : i32
    %c1_i32 = arith.constant 1 : i32
    %2 = arith.select %1, %c1_i32, %c16_i32 : i32
    %3 = vector.broadcast %2 : i32 to vector<1x1x256xi32>
    %4 = arith.remsi %0, %3 : vector<1x1x256xi32>
    %c0_i32_0 = arith.constant 0 : i32
    %5 = vector.broadcast %c0_i32_0 : i32 to vector<1x1x256xi32>
    %6 = arith.cmpi ne, %4, %5 : vector<1x1x256xi32>
    %c0_i32_1 = arith.constant 0 : i32
    %7 = vector.broadcast %c0_i32_1 : i32 to vector<1x1x256xi32>
    %8 = arith.cmpi slt, %4, %7 : vector<1x1x256xi32>
    %c0_i32_2 = arith.constant 0 : i32
    %9 = arith.cmpi slt, %2, %c0_i32_2 : i32
    %10 = vector.broadcast %9 : i1 to vector<1x1x256xi1>
    %11 = vector.broadcast %10 : vector<1x1x256xi1> to vector<1x1x256xi1>
    %12 = arith.xori %8, %11 : vector<1x1x256xi1>
    %13 = arith.andi %12, %6 : vector<1x1x256xi1>
    %14 = vector.broadcast %2 : i32 to vector<1x1x256xi32>
    %15 = arith.addi %4, %14 : vector<1x1x256xi32>
    %16 = arith.select %13, %15, %4 : vector<1x1x256xi1>, vector<1x1x256xi32>
    %c15_i32 = arith.constant 15 : i32
    %17 = vector.broadcast %c15_i32 : i32 to vector<1x1x256xi32>
    %18 = arith.cmpi ne, %16, %17 : vector<1x1x256xi32>
    %19 = arith.extui %18 : vector<1x1x256xi1> to vector<1x1x256xi32>
    %20 = arith.sitofp %19 : vector<1x1x256xi32> to vector<1x1x256xf32>
    %c240_i32 = arith.constant 240 : i32
    %21 = vector.broadcast %c240_i32 : i32 to vector<1x1x256xi32>
    %22 = arith.cmpi slt, %0, %21 : vector<1x1x256xi32>
    %23 = arith.extui %22 : vector<1x1x256xi1> to vector<1x1x256xi32>
    %24 = arith.sitofp %23 : vector<1x1x256xi32> to vector<1x1x256xf32>
    %c0_i32_3 = arith.constant 0 : i32
    %25 = arith.cmpi eq, %arg1, %c0_i32_3 : i32
    %26 = arith.extui %25 : i1 to i32
    %c0_i32_4 = arith.constant 0 : i32
    %27 = arith.cmpi ne, %26, %c0_i32_4 : i32
    scf.if %27 {
      %cst_17 = arith.constant 0.000000e+00 : f32
      %54 = vector.broadcast %cst_17 : f32 to vector<1x256xf32>
      %c0_18 = arith.constant 0 : index
      %c0_19 = arith.constant 0 : index
      %55 = vector.load %arg4[%c0_18, %c0_19] : memref<1x256xf32, #tpu.memory_space<vmem>>, vector<1x256xf32>
      tpu.vector_store %arg4[%c0_18, %c0_19], %54 {strides = array<i32>} : memref<1x256xf32, #tpu.memory_space<vmem>>, vector<1x256xf32>,
    } else {
    }
    %c0 = arith.constant 0 : index
    %c0_5 = arith.constant 0 : index
    %28 = vector.load %arg4[%c0, %c0_5] : memref<1x256xf32, #tpu.memory_space<vmem>>, vector<1x256xf32>
    %c0_6 = arith.constant 0 : index
    %c0_7 = arith.constant 0 : index
    %c0_8 = arith.constant 0 : index
    %29 = vector.load %arg2[%c0_6, %c0_7, %c0_8] : memref<1x4x256xf32, #tpu.memory_space<vmem>>, vector<1x4x256xf32>
    %c255_i32 = arith.constant 255 : i32
    %30 = tpu.dynamic_rotate %29 by %c255_i32 dim 2 : vector<1x4x256xf32>, i32 -> vector<1x4x256xf32>
    %c240_i32_9 = arith.constant 240 : i32
    %31 = tpu.dynamic_rotate %29 by %c240_i32_9 dim 2 : vector<1x4x256xf32>, i32 -> vector<1x4x256xf32>
    %32 = arith.subf %29, %30 : vector<1x4x256xf32>
    %33 = vector.broadcast %20 : vector<1x1x256xf32> to vector<1x4x256xf32>
    %34 = arith.mulf %32, %33 : vector<1x4x256xf32>
    %35 = arith.subf %29, %31 : vector<1x4x256xf32>
    %36 = vector.broadcast %24 : vector<1x1x256xf32> to vector<1x4x256xf32>
    %37 = arith.mulf %35, %36 : vector<1x4x256xf32>
    %38 = arith.mulf %34, %34 : vector<1x4x256xf32>
    %39 = arith.mulf %37, %37 : vector<1x4x256xf32>
    %40 = arith.addf %38, %39 : vector<1x4x256xf32>
    %cst = arith.constant 9.99999993E-9 : f32
    %41 = vector.broadcast %cst : f32 to vector<1x4x256xf32>
    %42 = arith.addf %40, %41 : vector<1x4x256xf32>
    %cst_10 = arith.constant dense<0.000000e+00> : vector<1x256xf32>
    %43 = vector.multi_reduction <add>, %42, %cst_10 [1] : vector<1x4x256xf32> to vector<1x256xf32>
    %44 = vector.shape_cast %43 : vector<1x256xf32> to vector<1x1x256xf32>
    %cst_11 = arith.constant 2.500000e-01 : f32
    %45 = vector.broadcast %cst_11 : f32 to vector<1x1x256xf32>
    %46 = arith.mulf %44, %45 : vector<1x1x256xf32>
    %47 = math.sqrt %46 : vector<1x1x256xf32>
    %cst_12 = arith.constant dense<0.000000e+00> : vector<1x256xf32>
    %48 = vector.multi_reduction <add>, %47, %cst_12 [0] : vector<1x1x256xf32> to vector<1x256xf32>
    %49 = arith.addf %28, %48 : vector<1x256xf32>
    %c0_13 = arith.constant 0 : index
    %c0_14 = arith.constant 0 : index
    %50 = vector.load %arg4[%c0_13, %c0_14] : memref<1x256xf32, #tpu.memory_space<vmem>>, vector<1x256xf32>
    tpu.vector_store %arg4[%c0_13, %c0_14], %49 {strides = array<i32>} : memref<1x256xf32, #tpu.memory_space<vmem>>, vector<1x256xf32>,
    %c0_i32_15 = arith.constant 0 : i32
    %51 = arith.cmpi eq, %arg1, %c0_i32_15 : i32
    %52 = arith.extui %51 : i1 to i32
    %c0_i32_16 = arith.constant 0 : i32
    %53 = arith.cmpi ne, %52, %c0_i32_16 : i32
    scf.if %53 {
      %cst_17 = arith.constant 0.000000e+00 : f32
      %54 = vector.broadcast %cst_17 : f32 to vector<1x1x1xf32>
      %c0_18 = arith.constant 0 : index
      %c0_19 = arith.constant 0 : index
      %55 = vector.load %arg4[%c0_18, %c0_19] : memref<1x256xf32, #tpu.memory_space<vmem>>, vector<1x256xf32>
      %56 = vector.shape_cast %55 : vector<1x256xf32> to vector<1x1x256xf32>
      %cst_20 = arith.constant dense<0.000000e+00> : vector<1xf32>
      %57 = vector.multi_reduction <add>, %56, %cst_20 [1, 2] : vector<1x1x256xf32> to vector<1xf32>
      %58 = vector.shape_cast %57 : vector<1xf32> to vector<1x1x1xf32>
      %59 = vector.extract %58[0, 0, 0] : f32 from vector<1x1x1xf32>
      %60 = vector.broadcast %59 : f32 to vector<1x1x1xf32>
      %61 = arith.addf %54, %60 : vector<1x1x1xf32>
      %c0_21 = arith.constant 0 : index
      %c0_22 = arith.constant 0 : index
      %c0_23 = arith.constant 0 : index
      %62 = vector.load %arg3[%c0_21, %c0_22, %c0_23] : memref<1x1x1xf32, #tpu.memory_space<vmem>>, vector<1x1x1xf32>
      tpu.vector_store %arg3[%c0_21, %c0_22, %c0_23], %61 {strides = array<i32>} : memref<1x1x1xf32, #tpu.memory_space<vmem>>, vector<1x1x1xf32>,
    } else {
    }
    return
  }
  func.func @transform_0(%arg0: i32, %arg1: i32) -> (i32, i32, i32) {
    %c1_i32 = arith.constant 1 : i32
    %0 = arith.muli %arg0, %c1_i32 : i32
    %1 = arith.addi %0, %arg1 : i32
    %c0_i32 = arith.constant 0 : i32
    %c0_i32_0 = arith.constant 0 : i32
    %c0_i32_1 = arith.constant 0 : i32
    return %1, %c0_i32, %c0_i32_0 : i32, i32, i32
  }
  func.func @transform_1(%arg0: i32, %arg1: i32) -> (i32, i32, i32) {
    %c0_i32 = arith.constant 0 : i32
    %c0_i32_0 = arith.constant 0 : i32
    %c0_i32_1 = arith.constant 0 : i32
    return %arg0, %c0_i32, %c0_i32_0 : i32, i32, i32
  }
}

</mosaic_0001>

<bundles_post_ra>
// kernel: tpu_custom_call.1
= control target key start
LH: loop header
LB: loop body
LE: loop exit
PB: predicated region body
PF: predicated region fallthrough
CT: control target
= control target key end

     0   :  { %6 = vsyncpa [#allocation4], 0  ;;  %s682_s0 = inlined_call_operand.hbm [shape: f32[2,4,256], index: 0, kind: input, shape index: {}]   ;;  %s683_s1 = inlined_call_operand.vmem [shape: f32[2,1,1], index: 1, kind: output, shape index: {}]  }
   0x1   :  { %8 = vsyncpa [#allocation4 + $0x1], 0  ;;  %s580_s6 = smov 0   ;;  %s582_s7 = smov 0  }
   0x2   :  { %s584_s8 = smov 0   ;;  %s586_s9 = smov 0  }
   0x3   :  { %s588_s10 = smov 0   ;;  %s590_s11 = smov 0  }
   0x4 LB: > { %s406_s12 = sadd.s32 4294967295, %s565_s11   ;;  %s26_s13 = sadd.s32 1, %s561_s10  ;;  %s565_s11 = sphi %s590_s11, %s14_s11   ;;  %s561_s10 = sphi %s588_s10, %s692_s10   ;;  %s557_s9 = sphi %s586_s9, %s691_s9   ;;  %s553_s8 = sphi %s584_s8, %s690_s8   ;;  %s549_s7 = sphi %s582_s7, %s689_s7   ;;  %s545_s6 = sphi %s580_s6, %s688_s6  }
   0x5   : > { %p28_p0 = scmp.ge.s32.totalorder %s26_s13, 2  ;;  %s35_s14 = sadd.s32 1, %s553_s8 }
   0x6   : > { %p42_p1 = scmp.ne.s32.totalorder %s553_s8, %s549_s7  ;;  %p43_p2 = scmp.eq.s32.totalorder %s565_s11, 0 }
   0x7   : > { %s694_s13 = smov (%p28_p0, %s26_s13), 0  ;;  %p48_p4 = scmp.ne.s32.totalorder %s549_s7, %s545_s6 }
   0x8   : > { %p616_p3 = por %p43_p2, %p42_p1  ;;  %s32_s16 = ssub.s32 %s561_s10, %s694_s13 }
   0x9   : > { %p49_p5 = scmp.eq.s32.totalorder %s406_s12, 0  ;;  %p33_p6 = scmp.eq.s32.totalorder %s32_s16, 0 }
   0xa   : > { %p429_p8 = scmp.lt.s32.totalorder %s565_s11, 2  ;;  %s98_s19 = sand.u32 1, %s553_s8  }
   0xb   : > { %p623_p7 = por %p49_p5, %p48_p4  ;;  %s420_s20 = sshll.u32 %s561_s10, 3 }
   0xc   : > { %s629_s18 = scalar_select %p33_p6, %s553_s8, %s35_s14  }
   0xd   : > { %s410_s21 = sshll.u32 %s98_s19, 3  ;;  %s108_s24 = scalar_lea.hbm %s682_s0, %s420_s20 }
   0xe   : > { %s110_s25 = sshll.u32 %s108_s24, 4  ;;  %s102_s26 = scalar_lea.vmem [#allocation3], %s410_s21  ;;  %s111_s25 = int_to_ptr.hbm [resolvable:$true] %s110_s25 }
   0xf   : > { %s112_s27 = sshll.u32 %s102_s26, 4  ;;  %p426_p9 = pnand %p429_p8, %p616_p3  ;;  %s113_s27 = int_to_ptr.vmem [resolvable:$true] %s112_s27 }
  0x10   : > { %p413_p10 = scmp.ge.s32.totalorder %s565_s11, 1  ;;  %p117_p11 = scmp.lt.s32.totalorder %s565_s11, 3 }
  0x11   : > { %s99_s28 = scalar_lea.sflag [#allocation4], %s98_s19 }
  0x12   : > { %428 = dma.hbm_to_vmem [thread:$0]  (!%p426_p9), %s111_s25, 128, %s113_s27, %s99_s28  }
  0x13   : > { %p118_p12 = pnand %p413_p10, %p117_p11 }
  0x14   : > { %s123_s29 = sand.u32 (!%p118_p12), 1, %s549_s7  }
  0x15   : > { %121 = sbr.rel (%p118_p12) target bundleno = 424 (0x1a8), region = 24  ;;  %s414_s30 = sshll.u32 (!%p118_p12), %s123_s29, 3 }
  0x16   : > { %s124_s2 = scalar_lea.sflag (!%p118_p12), [#allocation4], %s123_s29  ;;  %s127_s3 = scalar_lea.vmem (!%p118_p12), [#allocation3], %s414_s30 }
  0x1a   : > { %540 = dma.done.wait (%p623_p7), %s124_s2, 128  }
  0x1b   : > { %542 = vsyncadd (%p623_p7), %s124_s2, 4294967168  ;;  %v198_v0 = vld [vmem:[%s127_s3] sm:$0xff]  ;;  %s567_s4 = smov 127   ;;  %s568_s5 = smov 112   ;;  %v149_v5 = vlaneseq  ;;  %v569_v7 = vmov 0.0   ;;  %vm227_vm4 = vcmask 1043456  }
  0x1c   : > { %200 = vst [vmem:[#allocation1] ss:$2 sm:$0xff] %v198_v0  ;;  %vm304_vm10 = vcmask 1040384   ;;  %p146_p13 = scmp.lt.s32.totalorder %s557_s9, 1  ;;  %vm336_vm12 = vcmask 0  }
  0x1d   : > { %vm645_vm0 = vcmp.lt.s32.totalorder %v149_v5, 256  ;;  %v150_v8 = vand.u32 127, %v149_v5 }
  0x1e   : > { %196 = vst.msk [vmem:[#allocation2] sm:$0x3] %vm645_vm0, %v569_v7  ;;  %s696_s9 = smov (!%p146_p13, %s557_s9), 1 }
  0x1f   : > { %v151_v10 = vadd.s32 128, %v150_v8  ;;  %vm209_vm1 = vcmp.lt.s32.totalorder %v150_v8, 127  ;;  %v156_v12 = vand.u32 15, %v150_v8  ;;  %vm221_vm6 = vcmp.lt.s32.totalorder %v150_v8, 112  ;;  %s148_s14 = scalar_lea.vmem %s683_s1, %s696_s9 }
  0x21   : > { %v163_v11 = vand.u32 15, %v151_v10  ;;  %vm183_vm3 = vcmp.lt.s32.totalorder %v151_v10, 240  ;;  %vm176_vm5 = vcmp.ne.s32.totalorder %v156_v12, 15 }
  0x22   : > { %v417_v19 = vsel %vm183_vm3, 1.0, %v569_v7  ;;  %v415_v22 = vsel %vm176_vm5, 1.0, %v569_v7 }
  0x23   : > { %v201_v1 = vld.sshfl [vmem:[#allocation1] sm:$0xff pattern:$0x75316420]  ;;  %v202_v2 = vld.sshfl [vmem:[#allocation1 + $0x8] sm:$0xff pattern:$0x75316420] }
  0x24   : > { %205 = vrot.lane.b32.xlu0 %v201_v1, %s567_s4  ;;  %212 = vst [vmem:[#allocation1] ss:$2 sm:$0xff] %v198_v0  ;;  %vm177_vm2 = vcmp.ne.s32.totalorder %v163_v11, 15  ;;  %v245_v23 = vrot.slane %v417_v19, 4 }
  0x25   : > { %v416_v17 = vsel %vm177_vm2, 1.0, %v569_v7 }
  0x26   : > { %v233_v20 = vrot.slane %v416_v17, 4  ;;  %v246_v30 = vsel %vm227_vm4, 1.0, %v245_v23 }
  0x28   : > { %v234_v27 = vsel %vm227_vm4, %v415_v22, %v233_v20 }
  0x2b   : > { %v213_v3 = vld.sshfl [vmem:[#allocation1] sm:$0xff pattern:$0x75316420]  ;;  %v214_v4 = vld.sshfl [vmem:[#allocation1 + $0x8] sm:$0xff pattern:$0x75316420] }
  0x2c   : > { %207 = vrot.lane.b32.xlu0 %v202_v2, %s567_s4  ;;  %217 = vrot.lane.b32.xlu1 %v213_v3, %s568_s5 }
  0x34   : > { %219 = vrot.lane.b32.xlu1 %v214_v4, %s568_s5 }
  0x96   : > { %v206_v9 = vpop.permute.xlu0 %205 }
  0x9e   : > { %v208_v13 = vpop.permute.xlu0 %207  ;;  %v218_v14 = vpop.permute.xlu1 %217 }
  0x9f   : > { %v211_v15 = vsel %vm209_vm1, %v208_v13, %v206_v9  ;;  %v210_v18 = vsel %vm209_vm1, %v206_v9, %v208_v13  ;;  %v197_v13 = vld [vmem:[#allocation2] sm:$0x3] }
  0xa0   : > { %v226_v16 = vrot.slane %v211_v15, 4 }
  0xa2   : > { %v228_v21 = vsel %vm227_vm4, %v210_v18, %v226_v16 }
  0xa3   : > { %v230_v25 = vsub.f32 %v198_v0, %v228_v21 }
  0xa5   : > { %v236_v32 = vmul.f32 %v234_v27, %v230_v25 }
  0xa6   : > { %v220_v24 = vpop.permute.xlu1 %219 }
  0xa7   : > { %v223_v26 = vsel %vm221_vm6, %v220_v24, %v218_v14  ;;  %v222_v29 = vsel %vm221_vm6, %v218_v14, %v220_v24  ;;  %v249_v35 = vmul.f32 %v236_v32, %v236_v32 }
  0xa8   : > { %v239_v28 = vrot.slane %v223_v26, 4 }
  0xaa   : > { %v240_v31 = vsel %vm227_vm4, %v222_v29, %v239_v28 }
  0xab   : > { %v242_v33 = vsub.f32 %v198_v0, %v240_v31 }
  0xad   : > { %v248_v34 = vmul.f32 %v246_v30, %v242_v33 }
  0xaf   : > { %v250_v36 = vmul.f32 %v248_v34, %v248_v34 }
  0xb1   : > { %v251_v37 = vadd.f32 %v250_v36, %v249_v35 }
  0xb3   : > { %v252_v38 = vadd.f32 1e-08, %v251_v37 }
  0xb5   : > { %254 = vst [vmem:[#allocation1] ss:$2 sm:$0xff] %v252_v38 }
  0xbc   : > { %v255_v39 = vld.sshfl [vmem:[#allocation1] sm:$0xff pattern:$0x75316420]  ;;  %v256_v40 = vld.sshfl [vmem:[#allocation1 + $0x8] sm:$0xff pattern:$0x75316420] }
  0xbd   : > { %v259_v41 = vsel %vm227_vm4, %v255_v39, 0.0  ;;  %v266_v42 = vsel %vm227_vm4, %v256_v40, 0.0 }
  0xbe   : > { %v260_v43 = vrot.slane %v259_v41, 4  ;;  %v267_v44 = vrot.slane %v266_v42, 4 }
  0xc0   : > { %v261_v45 = vadd.f32 %v260_v43, %v259_v41  ;;  %v268_v46 = vadd.f32 %v267_v44, %v266_v42 }
  0xc2   : > { %v262_v47 = vrot.slane %v261_v45, 2  ;;  %v269_v48 = vrot.slane %v268_v46, 2 }
  0xc4   : > { %v263_v49 = vadd.f32 %v262_v47, %v261_v45  ;;  %v270_v50 = vadd.f32 %v269_v48, %v268_v46 }
  0xc6   : > { %v264_v51 = vrot.slane %v263_v49, 1  ;;  %v271_v52 = vrot.slane %v270_v50, 1 }
  0xc8   : > { %v265_v53 = vadd.f32 %v264_v51, %v263_v49  ;;  %v272_v54 = vadd.f32 %v271_v52, %v270_v50 }
  0xca   : > { %v273_v55 = vmul.f32 0.25, %v265_v53  ;;  %v274_v56 = vmul.f32 0.25, %v272_v54 }
  0xcc   : > { %481 = vrsqrt.f32 %v273_v55  ;;  %vm282_vm7 = vcmp.eq.f32.partialorder %v273_v55, inf  ;;  %vm294_vm8 = vcmp.eq.f32.partialorder %v274_v56, inf  ;;  %v297_v8 = vand.u32 2147483648, %v274_v56 }
  0xcd   : > { %483 = vrsqrt.f32 %v274_v56  ;;  %vm296_vm9 = vcmp.eq.f32.partialorder %v274_v56, 0.0  ;;  %v285_v11 = vand.u32 2147483648, %v273_v55  ;;  %vm284_vm11 = vcmp.eq.f32.partialorder %v273_v55, 0.0 }
  0xd2   : > { %v482_v57 = vpop.eup %481 }
  0xd3   : > { %v484_v58 = vpop.eup %483  ;;  %v276_v59 = vmul.f32 %v482_v57, %v273_v55 }
  0xd4   : > { %v288_v60 = vmul.f32 %v484_v58, %v274_v56 }
  0xd5   : > { %v277_v61 = vmul.f32 %v482_v57, %v276_v59 }
  0xd6   : > { %v289_v62 = vmul.f32 %v484_v58, %v288_v60 }
  0xd7   : > { %v278_v63 = vmul.f32 0.5, %v277_v61 }
  0xd8   : > { %v290_v0 = vmul.f32 0.5, %v289_v62 }
  0xd9   : > { %v279_v1 = vsub.f32 1.5, %v278_v63 }
  0xda   : > { %v291_v2 = vsub.f32 1.5, %v290_v0 }
  0xdb   : > { %v280_v3 = vmul.f32 %v482_v57, %v279_v1 }
  0xdc   : > { %v292_v4 = vmul.f32 %v484_v58, %v291_v2 }
  0xdd   : > { %v281_v5 = vmul.f32 %v280_v3, %v273_v55 }
  0xde   : > { %v293_v7 = vmul.f32 %v292_v4, %v274_v56 }
  0xdf   : > { %v283_v9 = vsel %vm282_vm7, %v273_v55, %v281_v5 }
  0xe0   : > { %v295_v10 = vsel %vm294_vm8, %v274_v56, %v293_v7  ;;  %v286_v15 = vsel %vm284_vm11, %v285_v11, %v283_v9 }
  0xe1   : > { %v298_v12 = vsel %vm296_vm9, %v297_v8, %v295_v10 }
  0xe2   : > { %v303_v14 = vrot.slane %v298_v12, 7 }
  0xe4   : > { %v305_v16 = vsel %vm304_vm10, %v286_v15, %v303_v14 }
  0xe5   : > { %v307_v17 = vadd.f32 %v305_v16, %v197_v13 }
  0xe7   : > { %312 = vst.msk [vmem:[#allocation2] sm:$0x3] %vm645_vm0, %v307_v17 }
  0xee   : > { %v316_v18 = vld [vmem:[#allocation2] sm:$0x3] }
  0xef   : > { %v318_v19 = vperm.slane %v316_v18, 0  ;;  %v319_v20 = vperm.slane %v316_v18, 1 }
  0xf1   : > { %v322_v21 = vsel %vm304_vm10, %v318_v19, 0.0  ;;  %v323_v22 = vsel %vm304_vm10, %v319_v20, 0.0 }
  0xf2   : > { %v324_v23 = vadd.f32 %v323_v22, %v322_v21 }
  0xf4   : > { %325 = vadd.xlane.f32.xlu2 %v324_v23 }
 0x167   : > { %v326_v24 = vpop.xlane.xlu2 %325 }
 0x168   : > { %v327_v25 = vrot.slane %v326_v24, 4 }
 0x16a   : > { %v328_v26 = vadd.f32 %v327_v25, %v326_v24 }
 0x16c   : > { %v329_v27 = vrot.slane %v328_v26, 2 }
 0x16e   : > { %v330_v28 = vadd.f32 %v329_v27, %v328_v26 }
 0x170   : > { %v331_v29 = vrot.slane %v330_v28, 1 }
 0x172   : > { %v332_v30 = vadd.f32 %v331_v29, %v330_v28 }
 0x174   : > { %421 = vpush %v332_v30 }
 0x1a5   : > { %s422_s15 = spop %421 }
 0x1a6   : > { %v334_v6 = vstv %s422_s15 }
 0x1a7   : > { %337 = vst.msk [vmem:[%s148_s14] sm:$0x1] %vm336_vm12, %v334_v6 }
 0x1a8 PF: > { %s14_s11 = sadd.s32 1, %s565_s11   ;;  %s688_s6 = smov %s549_s7 }
 0x1a9   : > { %p11_p0 = scmp.ge.s32.totalorder %s14_s11, 4   ;;  %s689_s7 = smov %s553_s8 }
 0x1aa   : > { %s690_s8 = smov %s629_s18  ;;  %s691_s9 = smov %s561_s10 }
 0x1ab   : > { %s692_s10 = smov %s694_s13  ;;  %13 = sbr.rel (!%p11_p0) target bundleno = 4 (0x4), region = 72 }
 0x1b0   :  { %355 = vsyncpa [#allocation4], 1 }
 0x1b1   :  { %357 = vsyncpa [#allocation4 + $0x1], 1 }

</bundles_post_ra>
